<compile_context>
chip_gen: v7x
topology: tpu7x:2x2x1
jax: 0.10.0
libtpu: 0.0.40
codegen_flags: <defaults>
</compile_context>

<pallas_src>
import math
import functools
import numpy as np
import jax
import jax.numpy as jnp
from jax.experimental import pallas as pl
from jax.experimental.pallas import tpu as pltpu

ROT_DIM = 48            # RotaryEmbedding(dim=48, use_xpos=True)
XPOS_SCALE_BASE = 512.0 # lucidrains rotary_embedding_torch default
RMS_EPS = 1e-12         # F.normalize eps used by RMSNorm
NEG_INF = -1e30


# ----------------------------------------------------------------------------- kernel
def _encoder_kernel(num_heads, head_dim, block_batch,
                    x_ref,
                    rcq_ref, raq_ref, rbq_ref, rck_ref, rak_ref, rbk_ref,
                    g1_ref, w1_ref, b1_ref,
                    wqkv_ref, bqkv_ref, wo_ref, bo_ref,
                    g2_ref, w2_ref, b2_ref,
                    g3_ref, w3_ref, b3_ref,
                    g4_ref, w4_ref, b4_ref,
                    out_ref, oheads_ref):
    f32 = jnp.float32
    bf16 = jnp.bfloat16

    x = x_ref[...]                                 # (R, D) f32, R = Bt*S
    R, D = x.shape
    S = R // block_batch
    d_scale = float(math.sqrt(D))
    inv_sqrt_dh = 1.0 / math.sqrt(head_dim)

    def dotw(a, w):
        # activation f32 -> bf16, weight already bf16, accumulate f32 on the MXU.
        return jnp.dot(a.astype(bf16), w, preferred_element_type=f32)

    def rms(t, g):
        # lucidrains RMSNorm: F.normalize(t, dim=-1) * sqrt(D) * g   (all f32)
        ss = jnp.sum(t * t, axis=-1, keepdims=True)
        inv = jax.lax.rsqrt(jnp.maximum(ss, RMS_EPS * RMS_EPS))
        return t * inv * d_scale * g

    def tile_rows(t):
        # (S, D) grid-invariant table -> (R, D) slab (cheap sublane concat).
        if block_batch == 1:
            return t
        return jnp.concatenate([t] * block_batch, axis=0)

    # ---- encode: RMSNorm -> Linear -> xPosAttention -> RMSNorm -> Linear
    h = rms(x, g1_ref[...])
    h = dotw(h, w1_ref[...]) + b1_ref[...]

    # fused QKV projection: one (R, D) x (D, 3D) matmul
    qkv = dotw(h, wqkv_ref[...]) + bqkv_ref[...]
    q = qkv[:, :D]
    k = qkv[:, D:2 * D]
    v = qkv[:, 2 * D:]

    # xPos rotary via XLU lane rotations (no permutation matmul):
    #   rot(t)[:, j] = t[:, j]*C[:, j] + roll(t,+1)[:, j]*A[:, j] + roll(t,-1)[:, j]*B[:, j]
    # A/B carry the rotate_half sign + pair selection (built host-side, already
    # matched to the probed roll convention); lanes past the 48 rotary dims of
    # each head have A=B=0 and C=1 so they pass through.
    CQ, AQ, BQ = tile_rows(rcq_ref[...]), tile_rows(raq_ref[...]), tile_rows(rbq_ref[...])
    CK, AK, BK = tile_rows(rck_ref[...]), tile_rows(rak_ref[...]), tile_rows(rbk_ref[...])
    qr = q * CQ + pltpu.roll(q, 1, 1) * AQ + pltpu.roll(q, D - 1, 1) * BQ
    kr = k * CK + pltpu.roll(k, 1, 1) * AK + pltpu.roll(k, D - 1, 1) * BK

    qr = qr.astype(bf16)
    kr = kr.astype(bf16)
    v = v.astype(bf16)

    # block-diagonal additive mask built in-kernel (no (R,R) HBM table).
    if block_batch > 1:
        row_b = jax.lax.broadcasted_iota(jnp.int32, (R, R), 0) // S
        col_b = jax.lax.broadcasted_iota(jnp.int32, (R, R), 1) // S
        bias = jnp.where(row_b == col_b, 0.0, NEG_INF).astype(f32)
    else:
        bias = None

    # attention: all Bt batch elements at once per head; each head's output is
    # written into its lane slice of a single (R, D) f32 scratch (no concat).
    for hi in range(num_heads):
        lo = hi * head_dim
        qh = qr[:, lo:lo + head_dim]
        kh = kr[:, lo:lo + head_dim]
        vh = v[:, lo:lo + head_dim]
        scores = jax.lax.dot_general(
            qh, kh, (((1,), (1,)), ((), ())),
            preferred_element_type=f32) * inv_sqrt_dh
        if bias is not None:
            scores = scores + bias
        scores = scores - jnp.max(scores, axis=-1, keepdims=True)
        e = jnp.exp(scores)
        attn = e * pl.reciprocal(jnp.sum(e, axis=-1, keepdims=True), approx=True)
        oheads_ref[:, lo:lo + head_dim] = jnp.dot(
            attn.astype(bf16), vh, preferred_element_type=f32)

    o = dotw(oheads_ref[...], wo_ref[...]) + bo_ref[...]

    h = rms(o, g2_ref[...])
    h = dotw(h, w2_ref[...]) + b2_ref[...]
    inter = h + x                                   # first residual

    # ---- encode2: RMSNorm -> Linear -> GELU -> RMSNorm -> Linear
    h = rms(inter, g3_ref[...])
    h = dotw(h, w3_ref[...]) + b3_ref[...]
    h = jax.nn.gelu(h, approximate=False)           # nn.GELU() exact (erf) form
    h = rms(h, g4_ref[...])
    h = dotw(h, w4_ref[...]) + b4_ref[...]

    out_ref[...] = h + inter                        # second residual


# ----------------------------------------------------------------------------- host-side tables
def _xpos_head_tables(seq_len, head_dim):
    """Per-head cos/sin * xpos-scale tables, padded to head_dim (cos pad=1, sin pad=0)."""
    assert head_dim >= ROT_DIM, "head dim must be >= rotary dim (48)"
    t = np.arange(seq_len, dtype=np.float32)
    inv_freq = 1.0 / (10000.0 ** (np.arange(0, ROT_DIM, 2, dtype=np.float32) / ROT_DIM))
    freqs = np.repeat(t[:, None] * inv_freq[None, :], 2, axis=-1)          # (S, 48)
    base = (np.arange(0, ROT_DIM, 2, dtype=np.float32) + 0.4 * ROT_DIM) / (1.4 * ROT_DIM)
    power = (t - seq_len // 2) / XPOS_SCALE_BASE
    scale = np.repeat(base[None, :] ** power[:, None], 2, axis=-1)         # (S, 48)
    cos, sin = np.cos(freqs), np.sin(freqs)
    pad = head_dim - ROT_DIM

    def padw(a, val):
        return np.pad(a, ((0, 0), (0, pad)), constant_values=val)

    cq = padw(cos * scale, 1.0)   # query: scale ** +1
    sq = padw(sin * scale, 0.0)
    ck = padw(cos / scale, 1.0)   # key:   scale ** -1
    sk = padw(sin / scale, 0.0)
    return cq, sq, ck, sk


def _xpos_coeff_tables(seq_len, head_dim, num_heads, roll1_is_prev):
    """Coefficient tables for the roll-based rotate_half.

    Returns (CQ, AQ, BQ, CK, AK, BK), each (S, num_heads*head_dim) f32, such that
        rot(t)[:, j] = t[:, j]*C[:, j] + roll(t, 1)[:, j]*A[:, j] + roll(t, D-1)[:, j]*B[:, j]
    `roll1_is_prev` says whether pltpu.roll(t, 1, axis=1)[:, j] == t[:, j-1].
    rotate_half on interleaved pairs: out[2i] = -t[2i+1], out[2i+1] = t[2i].
    """
    cq, sq, ck, sk = _xpos_head_tables(seq_len, head_dim)
    j = np.arange(head_dim)
    odd = (j % 2 == 1).astype(np.float32)
    even = (j % 2 == 0).astype(np.float32)
    prev_q, nxt_q = sq * odd, -sq * even     # coefficient of t[j-1] / t[j+1]
    prev_k, nxt_k = sk * odd, -sk * even
    if roll1_is_prev:
        aq, bq, ak, bk = prev_q, nxt_q, prev_k, nxt_k
    else:
        aq, bq, ak, bk = nxt_q, prev_q, nxt_k, prev_k
    tile = lambda a: np.tile(a, (1, num_heads)).astype(np.float32)
    return tuple(tile(a) for a in (cq, aq, bq, ck, ak, bk))


@functools.lru_cache(maxsize=None)
def _roll1_is_prev():
    """One-time probe: True iff pltpu.roll(x, 1, axis=1)[:, j] == x[:, j-1]."""
    def kern(x_ref, o_ref):
        o_ref[...] = pltpu.roll(x_ref[...], 1, 1)
    x = jnp.asarray(np.tile(np.arange(128, dtype=np.float32)[None, :], (8, 1)))
    y = pl.pallas_call(kern, out_shape=jax.ShapeDtypeStruct((8, 128), jnp.float32))(x)
    return bool(float(y[0, 1]) == 0.0)


def _choose_block_batch(B, S, target_rows=256):
    """Largest divisor of B with Bt*S <= max(S, target_rows), preferring >=2 grid steps
    (v7x has two TensorCores; a 1-step 'parallel' grid cannot be sharded)."""
    limit = max(1, target_rows // S)
    divs = [d for d in range(1, B + 1) if B % d == 0 and d <= limit]
    if not divs:
        divs = [1]
    multi = [d for d in divs if B // d >= 2]
    return max(multi) if multi else max(divs)


# ----------------------------------------------------------------------------- wrapper
def language_encoder_v2(words, params, num_heads, block_batch=None, target_rows=256):
    # target_rows: ~256 for v6e/v7x (2x256^2 MXU); use 128 on v5e (4x128^2 MXU).
    B, S, D = words.shape
    assert D % num_heads == 0
    Dh = D // num_heads
    if block_batch is None:
        block_batch = _choose_block_batch(B, S, target_rows)
    Bt = block_batch
    assert B % Bt == 0, "block_batch must divide batch"
    R = Bt * S
    steps = B // Bt

    # (S, D) rotary coefficient tables (f32); tiled across the batch block in-kernel.
    tables = [jnp.asarray(t) for t in
              _xpos_coeff_tables(S, Dh, num_heads, _roll1_is_prev())]

    # weights in bf16 (MXU operands), biases/gains in f32; Q/K/V fused into (D, 3D).
    p = params
    bf16 = jnp.bfloat16
    wqkv = jnp.concatenate([p['wq'], p['wk'], p['wv']], axis=1).astype(bf16)
    bqkv = jnp.concatenate([p['bq'], p['bk'], p['bv']], axis=1)
    wc = lambda w: w.astype(bf16)
    pvals = [p['g1'], wc(p['w1']), p['b1'], wqkv, bqkv, wc(p['wo']), p['bo'],
             p['g2'], wc(p['w2']), p['b2'], p['g3'], wc(p['w3']), p['b3'],
             p['g4'], wc(p['w4']), p['b4']]

    x2d = words.reshape(B * S, D).astype(jnp.float32)

    def bcast_spec(shape):
        # grid-invariant operand (weights / tables); same block every grid step,
        # so Pallas does not re-DMA it across iterations.
        return pl.BlockSpec(shape, lambda i: (0,) * len(shape))

    in_specs = [pl.BlockSpec((R, D), lambda i: (i, 0))]
    in_specs += [bcast_spec(t.shape) for t in tables]
    in_specs += [bcast_spec(v.shape) for v in pvals]

    # advisory cost estimate for XLA scheduling around the custom call
    flops = steps * (16 * R * D * D + 4 * R * R * D)
    transcendentals = steps * (num_heads * R * R + R * D + 6 * R)
    bytes_accessed = (2 * B * S * D * 4) + 8 * D * D * 2 + 6 * S * D * 4 + 16 * D * 4

    kernel = functools.partial(_encoder_kernel, num_heads, Dh, Bt)
    out2d = pl.pallas_call(
        kernel,
        out_shape=jax.ShapeDtypeStruct((B * S, D), jnp.float32),
        grid=(steps,),
        in_specs=in_specs,
        out_specs=pl.BlockSpec((R, D), lambda i: (i, 0)),
        scratch_shapes=[pltpu.VMEM((R, D), jnp.float32)],   # per-head attn outputs
        compiler_params=pltpu.CompilerParams(
            dimension_semantics=("parallel",),               # batch blocks independent
            vmem_limit_bytes=64 * 1024 * 1024),
        cost_estimate=pl.CostEstimate(
            flops=flops, transcendentals=transcendentals,
            bytes_accessed=bytes_accessed),
    )(x2d, *tables, *pvals)
    return out2d.reshape(B, S, D)


# ----------------------------------------------------------------------------- reference & demo
def reference(words, params, num_heads):
    """Pure-JAX f32 reference of the same math (kernel sanity check)."""
    B, S, D = words.shape
    Dh = D // num_heads
    cq, sq, ck, sk = (jnp.asarray(a) for a in _xpos_head_tables(S, Dh))
    d_scale = math.sqrt(D)
    p = params

    def rms(x, g):
        norm = jnp.sqrt(jnp.sum(x * x, axis=-1, keepdims=True))
        return x / jnp.maximum(norm, RMS_EPS) * d_scale * g

    def rot_half(t):   # interleaved pairs: (x0, x1) -> (-x1, x0)
        t2 = t.reshape(t.shape[:-1] + (Dh // 2, 2))
        return jnp.stack([-t2[..., 1], t2[..., 0]], axis=-1).reshape(t.shape)

    h = rms(words, p['g1']) @ p['w1'] + p['b1']
    q = (h @ p['wq'] + p['bq']).reshape(B, S, num_heads, Dh).transpose(0, 2, 1, 3)
    k = (h @ p['wk'] + p['bk']).reshape(B, S, num_heads, Dh).transpose(0, 2, 1, 3)
    v = (h @ p['wv'] + p['bv']).reshape(B, S, num_heads, Dh).transpose(0, 2, 1, 3)
    qr = q * cq + rot_half(q) * sq
    kr = k * ck + rot_half(k) * sk
    scores = jnp.einsum('bhsd,bhtd->bhst', qr, kr) / math.sqrt(Dh)
    attn = jax.nn.softmax(scores, axis=-1)
    o = jnp.einsum('bhst,bhtd->bhsd', attn, v).transpose(0, 2, 1, 3).reshape(B, S, D)
    o = o @ p['wo'] + p['bo']
    h = rms(o, p['g2']) @ p['w2'] + p['b2']
    inter = h + words
    h = rms(inter, p['g3']) @ p['w3'] + p['b3']
    h = jax.nn.gelu(h, approximate=False)
    h = rms(h, p['g4']) @ p['w4'] + p['b4']
    return h + inter


def init_params(key, dim):
    keys = jax.random.split(key, 32)
    ki = iter(keys)
    params = {}
    for name in ['w1', 'wq', 'wk', 'wv', 'wo', 'w2', 'w3', 'w4']:
        params[name] = (0.02 * jax.random.normal(next(ki), (dim, dim))).astype(jnp.float32)
    for name in ['b1', 'bq', 'bk', 'bv', 'bo', 'b2', 'b3', 'b4']:
        params[name] = (0.01 * jax.random.normal(next(ki), (1, dim))).astype(jnp.float32)
    for name in ['g1', 'g2', 'g3', 'g4']:
        params[name] = (1.0 + 0.1 * jax.random.normal(next(ki), (1, dim))).astype(jnp.float32)
    return params


if __name__ == "__main__":
    # small shapes consistent with the module: head dim (D/H) must cover the
    # 48-dim xPos rotary embedding, so D=128, H=2 -> Dh=64.  B=4 gives a 2-step
    # "parallel" grid with Bt=2 (two batch elements per (Bt*S, D) slab).
    B, S, D, H = 4, 32, 128, 2
    key = jax.random.PRNGKey(0)
    k_words, k_params = jax.random.split(key)
    words = jax.random.normal(k_words, (B, S, D), dtype=jnp.float32)
    params = init_params(k_params, D)

    out = language_encoder_v2(words, params, H)
    out = jax.block_until_ready(out)
    assert out.shape == (B, S, D)

    ref = reference(words, params, H)
    # bf16 MXU operands vs the pure-f32 reference -> allow ~1e-2-level tolerance.
    if not jnp.allclose(out, ref, atol=2e-2, rtol=2e-2):
        err = float(jnp.max(jnp.abs(out - ref)))
        raise AssertionError(f"Pallas kernel output mismatch vs JAX reference (max abs err {err})")
    print("KERNEL_OK")
</pallas_src>

<mosaic_0001>
module attributes {stable_mosaic.version = 11 : i64} {
  func.func @kern(%arg0: memref<8x128xf32, #tpu.memory_space<vmem>>, %arg1: memref<8x128xf32, #tpu.memory_space<vmem>>) attributes {dimension_semantics = [], scalar_prefetch = 0 : i64, scratch_operands = 0 : i64, tpu.core_type = #tpu.core_type<tc>} {
    %c0 = arith.constant 0 : index
    %c0_0 = arith.constant 0 : index
    %0 = vector.load %arg0[%c0, %c0_0] : memref<8x128xf32, #tpu.memory_space<vmem>>, vector<8x128xf32>
    %c1_i32 = arith.constant 1 : i32
    %1 = tpu.dynamic_rotate %0 by %c1_i32 dim 1 : vector<8x128xf32>, i32 -> vector<8x128xf32>
    %c0_1 = arith.constant 0 : index
    %c0_2 = arith.constant 0 : index
    %2 = vector.load %arg1[%c0_1, %c0_2] : memref<8x128xf32, #tpu.memory_space<vmem>>, vector<8x128xf32>
    tpu.vector_store %arg1[%c0_1, %c0_2], %1 {strides = array<i32>} : memref<8x128xf32, #tpu.memory_space<vmem>>, vector<8x128xf32>,
    return
  }
}

</mosaic_0001>

<bundles_post_ra>
// kernel: tpu_custom_call.1
= control target key start
LH: loop header
LB: loop body
LE: loop exit
PB: predicated region body
PF: predicated region fallthrough
CT: control target
= control target key end

     0   :  { %6 = vsyncpa [#allocation3], 0  ;;  %s128_s0 = inlined_call_operand.hbm [shape: f32[8,128], index: 0, kind: input, shape index: {}]   ;;  %s129_s1 = inlined_call_operand.hbm [shape: f32[8,128], index: 1, kind: output, shape index: {}]  }
   0x1   :  { %7 = vsyncpa [#allocation4], 0  ;;  %s91_s6 = smov [#allocation2]   ;;  %s43_s10 = scalar_lea.hbm %s128_s0, 128 }
   0x2   :  { %s14_s7 = sshll.u32 %s91_s6, 4  ;;  %p44_p0 = scmp.ne.s32.totalorder %s128_s0, %s43_s10  ;;  %s15_s7 = int_to_ptr.vmem [resolvable:$true] %s14_s7 }
   0x3   :  { %p47_p1 = scmp.lt.u32.totalorder %s43_s10, %s128_s0 }
   0x5   :  { %p49_p2 = pnand %p47_p1, %p44_p0 }
   0x7   :  { %52 = shalt.err (!%p49_p2)
}
   0x8   :  { %s53_s15 = scalar_lea.vmem %s15_s7, 128  ;;  %p58_p4 = scmp.lt.s32.totalorder %s15_s7, %s15_s7 }
   0x9   :  { %p54_p3 = scmp.ne.s32.totalorder %s15_s7, %s53_s15  ;;  %p59_p5 = scmp.lt.s32.totalorder %s53_s15, %s53_s15 }
   0xb   :  { %p60_p6 = por %p59_p5, %p58_p4 }
   0xd   :  { %p61_p7 = pnand %p60_p6, %p54_p3 }
   0xf   :  { %64 = shalt.err (!%p61_p7)
}
  0x10   :  { %17 = dma.hbm_to_vmem [thread:$0]  %s128_s0, 128, %s15_s7, [#allocation3]  }
  0x11   :  { %87 = dma.done.wait [#allocation3], 128  }
  0x12   :  { %88 = vsyncadd [#allocation3], 4294967168  ;;  %v21_v0 = vld [vmem:[#allocation2] sm:$0xff]  ;;  %s92_s18 = smov 1   ;;  %s93_s19 = smov [#allocation5]  }
  0x13   :  { %22 = vrot.lane.b32.xlu0 %v21_v0, %s92_s18  ;;  %s31_s20 = sshll.u32 %s93_s19, 4  ;;  %s32_s20 = int_to_ptr.vmem [resolvable:$true] %s31_s20 }
  0x14   :  { %s65_s21 = scalar_lea.vmem %s32_s20, 128  ;;  %p70_p9 = scmp.lt.s32.totalorder %s32_s20, %s32_s20 }
  0x15   :  { %p66_p8 = scmp.ne.s32.totalorder %s32_s20, %s65_s21  ;;  %p71_p10 = scmp.lt.s32.totalorder %s65_s21, %s65_s21 }
  0x17   :  { %p72_p11 = por %p71_p10, %p70_p9 }
  0x19   :  { %p73_p12 = pnand %p72_p11, %p66_p8 }
  0x85   :  { %v23_v1 = vpop.permute.xlu0 %22 }
  0x86   :  { %24 = vst [vmem:[#allocation5] sm:$0xff] %v23_v1 }
  0x87   :  { %76 = shalt.err (!%p73_p12)
}
  0x88   :  { %s77_s0 = scalar_lea.hbm %s129_s1, 128 }
  0x89   :  { %p78_p13 = scmp.ne.s32.totalorder %s129_s1, %s77_s0  ;;  %p81_p0 = scmp.lt.u32.totalorder %s77_s0, %s129_s1 }
  0x8b   :  { %p83_p1 = pnand %p81_p0, %p78_p13 }
  0x8d   :  { %86 = shalt.err (!%p83_p1)
}
  0x8e   :  { %34 = dma.vmem_to_hbm [thread:$0]  %s32_s20, 128, %s129_s1, [#allocation4]  }
  0x8f   :  { %89 = dma.done.wait [#allocation4], 128  }
  0x90   :  { %90 = vsyncadd [#allocation4], 4294967168 }
  0x91   :  { %38 = vsyncpa [#allocation3], 1 }
  0x92   :  { %39 = vsyncpa [#allocation4], 1 }

</bundles_post_ra>
